<compile_context>
chip_gen: v7x
topology: tpu7x:2x2x1
jax: 0.10.0
libtpu: 0.0.40
codegen_flags: <defaults>
</compile_context>

<pallas_src>
import functools

import jax
import jax.numpy as jnp
import numpy as np
from jax.experimental import pallas as pl
from jax.experimental.pallas import tpu as pltpu


def fast_self_attention_kernel(x_ref, mask_ref, wpack_ref, out_ref, *,
                               batch, seq_len, hidden, num_heads):
    """Whole FastSelfAttention forward in one invocation (everything resident in VMEM).

    Kernel-side shapes (f32):
      x_ref     : (B*S, H)          flattened input rows
      mask_ref  : (B*S, nh)         additive mask per row, pre-broadcast over heads
      wpack_ref : (H+1+nh, 2H+2nh)  packed parameters:
                    rows 0:H         [ wk^T | wqa_eff^T | wka^T | wt^T ]  (pre-scaled)
                    row  H           [ bk   | bqa_eff   | bka   | bt   ]  (pre-scaled)
                    rows H+1:H+1+nh  one-hot head-expansion E (nh, H) in columns 0:H
      out_ref   : (B*S, H)
    """
    f32 = jnp.float32
    H, nh, S = hidden, num_heads, seq_len

    x = x_ref[...].astype(f32)              # (R, H)
    mask = mask_ref[...].astype(f32)        # (R, nh)
    wp = wpack_ref[...]                     # single whole-block VMEM load

    w1 = wp[0:H, 0:H + nh]                  # [wk^T | wqa_eff^T]       (H, H+nh)
    b1 = wp[H:H + 1, 0:H + nh]              # [bk   | bqa_eff  ]       (1, H+nh)
    wka = wp[0:H, H + nh:H + 2 * nh]        # key_att weights, *1/sqrt(d)
    bka = wp[H:H + 1, H + nh:H + 2 * nh]
    wt = wp[0:H, H + 2 * nh:2 * H + 2 * nh]
    bt = wp[H:H + 1, H + 2 * nh:2 * H + 2 * nh]
    expand = wp[H + 1:H + 1 + nh, 0:H]      # E[h, j] = (j // d == h)   (nh, H)

    def softmax_over_seq(s):                # softmax over the sequence (sublane) axis
        s = s - jnp.max(s, axis=0, keepdims=True)
        e = jnp.exp(s)
        return e * pl.reciprocal(jnp.sum(e, axis=0, keepdims=True), approx=True)

    # Fused time-parallel projection: K and the (folded, pre-scaled) query scores in one
    # MXU push over all B*S rows.  The Q projection itself is folded into wqa_eff.
    proj = jnp.dot(x, w1, preferred_element_type=f32) + b1          # (R, H+nh)
    k = proj[:, 0:H]                                                # mixed_key_layer
    qs = proj[:, H:H + nh] + mask                                   # query_for_score

    # Query-attention pooling (per batch; B is tiny & static -> fully unrolled).
    qk_rows = []
    for b in range(batch):
        r0 = b * S
        k_b = k[r0:r0 + S, :]
        qw = softmax_over_seq(qs[r0:r0 + S, :])                     # (S, nh)
        qw_full = jnp.dot(qw, expand, preferred_element_type=f32)   # (S, H)
        pooled_q = jnp.sum(qw_full * k_b, axis=0, keepdims=True)    # (1, H)
        qk_rows.append(k_b * pooled_q)                              # mixed_query_key_layer
    qk = jnp.concatenate(qk_rows, axis=0)                           # (R, H)

    # Key-attention scores for all rows in a single matmul (weights pre-scaled).
    ks = jnp.dot(qk, wka, preferred_element_type=f32) + bka + mask  # (R, nh)

    wv_rows = []
    for b in range(batch):
        r0 = b * S
        kw = softmax_over_seq(ks[r0:r0 + S, :])                     # (S, nh)
        kw_full = jnp.dot(kw, expand, preferred_element_type=f32)   # (S, H)
        pooled_k = jnp.sum(kw_full * qk[r0:r0 + S, :], axis=0, keepdims=True)  # (1, H)
        wv_rows.append(pooled_k * k[r0:r0 + S, :])                  # weighted_value
    wv = jnp.concatenate(wv_rows, axis=0)                           # (R, H)

    # TODO(synk): out_dropout implemented as eval-mode identity only.
    out = jnp.dot(wv, wt, preferred_element_type=f32) + bt + k      # transform + residual
    out_ref[...] = out.astype(out_ref.dtype)                        # one full-block store


def pack_params(params):
    """One-time parameter prep (outside jit): fold, scale, transpose and pack."""
    wq, bq = np.asarray(params["wq"]), np.asarray(params["bq"])
    wk, bk = np.asarray(params["wk"]), np.asarray(params["bk"])
    wqa, bqa = np.asarray(params["wqa"]), np.asarray(params["bqa"])
    wka, bka = np.asarray(params["wka"]), np.asarray(params["bka"])
    wt, bt = np.asarray(params["wt"]), np.asarray(params["bt"])

    H = wq.shape[0]
    nh = wqa.shape[0]
    d = H // nh
    inv = 1.0 / float(np.sqrt(d))

    # Fold the Q projection into the query-score projection and pre-apply 1/sqrt(d):
    #   query_for_score = ((x @ wq.T + bq) @ wqa.T + bqa) / sqrt(d)
    #                   = x @ wqa_eff.T + bqa_eff
    wqa_eff = (wqa @ wq) * inv                      # (nh, H)
    bqa_eff = (wqa @ bq + bqa) * inv                # (nh,)
    wka_s, bka_s = wka * inv, bka * inv

    w_cols = np.concatenate([wk.T, wqa_eff.T, wka_s.T, wt.T], axis=1)   # (H, 2H+2nh)
    b_row = np.concatenate([bk, bqa_eff, bka_s, bt])[None, :]           # (1, 2H+2nh)

    # One-hot head-expansion E[h, j] = (j // d == h), padded to the packed width.
    expand = (np.arange(H)[None, :] // d == np.arange(nh)[:, None]).astype(np.float32)
    expand_pad = np.zeros((nh, w_cols.shape[1]), np.float32)
    expand_pad[:, :H] = expand

    wpack = np.concatenate([w_cols, b_row, expand_pad], axis=0).astype(np.float32)
    return jnp.asarray(wpack)                       # (H+1+nh, 2H+2nh)


@jax.jit
def fast_self_attention_forward(x, attention_mask, wpack):
    """x: (B,S,H); attention_mask: (B,1,S,S) additive; wpack: output of pack_params."""
    B, S, H = x.shape
    nh = wpack.shape[0] - H - 1

    x2 = x.reshape(B * S, H)                                       # free reshape
    # Per-row mask value mask[b, 0, s], pre-broadcast over heads (fuses with the gather).
    mask2 = jnp.broadcast_to(attention_mask[:, :, -1].reshape(B * S, 1), (B * S, nh))

    kernel = functools.partial(fast_self_attention_kernel,
                               batch=B, seq_len=S, hidden=H, num_heads=nh)
    vmem = pl.BlockSpec(memory_space=pltpu.MemorySpace.VMEM)       # whole array -> VMEM

    out2 = pl.pallas_call(
        kernel,
        out_shape=jax.ShapeDtypeStruct((B * S, H), x.dtype),
        in_specs=[vmem, vmem, vmem],
        out_specs=vmem,
    )(x2, mask2, wpack)
    return out2.reshape(B, S, H)


def _reference(x, attention_mask, p):
    """Pure-JAX transcription of FastSelfAttention.forward (eval mode)."""
    B, S, H = x.shape
    nh = p["wqa"].shape[0]
    d = H // nh
    inv = 1.0 / (d ** 0.5)

    q = x @ p["wq"].T + p["bq"]
    k = x @ p["wk"].T + p["bk"]
    m = attention_mask[:, :, -1]                                        # (B, 1, S)

    qs = jnp.transpose(q @ p["wqa"].T + p["bqa"], (0, 2, 1)) * inv + m  # (B, nh, S)
    qw = jax.nn.softmax(qs, axis=-1)[:, :, None, :]                     # (B, nh, 1, S)
    k_h = k.reshape(B, S, nh, d).transpose(0, 2, 1, 3)                  # (B, nh, S, d)
    pooled_q = jnp.matmul(qw, k_h)                                      # (B, nh, 1, d)
    pooled_q = pooled_q.transpose(0, 2, 1, 3).reshape(B, 1, H)

    qk = k * pooled_q                                                   # (B, S, H)
    ks = jnp.transpose(qk @ p["wka"].T + p["bka"], (0, 2, 1)) * inv + m
    kw = jax.nn.softmax(ks, axis=-1)[:, :, None, :]
    qk_h = qk.reshape(B, S, nh, d).transpose(0, 2, 1, 3)
    pooled_k = jnp.matmul(kw, qk_h)                                     # (B, nh, 1, d)

    wv = (pooled_k * k_h).transpose(0, 2, 1, 3).reshape(B, S, H)
    return wv @ p["wt"].T + p["bt"] + k


if __name__ == "__main__":
    B, S, H, NH = 2, 8, 32, 4
    key = jax.random.PRNGKey(0)
    keys = jax.random.split(key, 11)
    bound = 1.0 / (H ** 0.5)   # PyTorch nn.Linear default init bound (in_features=H)

    x = jax.random.normal(keys[0], (B, S, H), jnp.float32)
    # BERT-style additive extended mask (B,1,S,S); mask last two positions of batch 1.
    attention_mask = jnp.zeros((B, 1, S, S), jnp.float32)
    attention_mask = attention_mask.at[1, 0, :, S - 2:].set(-10000.0)

    def lin(kw, kb, out_dim, in_dim):
        w = jax.random.uniform(kw, (out_dim, in_dim), jnp.float32, -bound, bound)
        b = jax.random.uniform(kb, (out_dim,), jnp.float32, -bound, bound)
        return w, b

    wq, bq = lin(keys[1], keys[2], H, H)
    wk, bk = lin(keys[3], keys[4], H, H)
    wqa, bqa = lin(keys[5], keys[6], NH, H)
    wka, bka = lin(keys[7], keys[8], NH, H)
    wt, bt = lin(keys[9], keys[10], H, H)
    params = dict(wq=wq, bq=bq, wk=wk, bk=bk, wqa=wqa, bqa=bqa,
                  wka=wka, bka=bka, wt=wt, bt=bt)

    wpack = pack_params(params)            # one-time parameter prep (outside jit)

    out = fast_self_attention_forward(x, attention_mask, wpack)
    out = jax.block_until_ready(out)

    ref = _reference(x, attention_mask, params)
    assert out.shape == (B, S, H)
    # Tolerance: folding wqa_eff = wqa @ wq reassociates fp32 sums and
    # pl.reciprocal(approx=True) perturbs the softmax normalization slightly;
    # using the exact divide restores 1e-4 parity with the reference.
    assert jnp.allclose(out, ref, atol=2e-3, rtol=2e-3), "mismatch vs reference"

    print("KERNEL_OK")
</pallas_src>

<mosaic_0001>
module attributes {stable_mosaic.version = 11 : i64} {
  func.func @fast_self_attention_kernel(%arg0: memref<16x32xf32, #tpu.memory_space<vmem>>, %arg1: memref<16x4xf32, #tpu.memory_space<vmem>>, %arg2: memref<37x72xf32, #tpu.memory_space<vmem>>, %arg3: memref<16x32xf32, #tpu.memory_space<vmem>>) attributes {dimension_semantics = [], scalar_prefetch = 0 : i64, scratch_operands = 0 : i64, tpu.core_type = #tpu.core_type<tc>} {
    %c0 = arith.constant 0 : index
    %c0_0 = arith.constant 0 : index
    %0 = vector.load %arg0[%c0, %c0_0] : memref<16x32xf32, #tpu.memory_space<vmem>>, vector<16x32xf32>
    %c0_1 = arith.constant 0 : index
    %c0_2 = arith.constant 0 : index
    %1 = vector.load %arg1[%c0_1, %c0_2] : memref<16x4xf32, #tpu.memory_space<vmem>>, vector<16x4xf32>
    %c0_3 = arith.constant 0 : index
    %c0_4 = arith.constant 0 : index
    %2 = vector.load %arg2[%c0_3, %c0_4] : memref<37x72xf32, #tpu.memory_space<vmem>>, vector<37x72xf32>
    %3 = vector.extract_strided_slice %2 {offsets = [0, 0], sizes = [32, 36], strides = [1, 1]} : vector<37x72xf32> to vector<32x36xf32>
    %4 = vector.extract_strided_slice %2 {offsets = [32, 0], sizes = [1, 36], strides = [1, 1]} : vector<37x72xf32> to vector<1x36xf32>
    %5 = vector.extract_strided_slice %2 {offsets = [0, 36], sizes = [32, 4], strides = [1, 1]} : vector<37x72xf32> to vector<32x4xf32>
    %6 = vector.extract_strided_slice %2 {offsets = [32, 36], sizes = [1, 4], strides = [1, 1]} : vector<37x72xf32> to vector<1x4xf32>
    %7 = vector.extract_strided_slice %2 {offsets = [0, 40], sizes = [32, 32], strides = [1, 1]} : vector<37x72xf32> to vector<32x32xf32>
    %8 = vector.extract_strided_slice %2 {offsets = [32, 40], sizes = [1, 32], strides = [1, 1]} : vector<37x72xf32> to vector<1x32xf32>
    %9 = vector.extract_strided_slice %2 {offsets = [33, 0], sizes = [4, 32], strides = [1, 1]} : vector<37x72xf32> to vector<4x32xf32>
    %cst = arith.constant dense<0.000000e+00> : vector<16x36xf32>
    %10 = tpu.matmul %0, %3, %cst {dimension_numbers = #tpu.dot_dimension_numbers<[1], [0], [0], [1], [0, 0, 1, 1], [], []>} : vector<16x32xf32>, vector<32x36xf32>, vector<16x36xf32> -> vector<16x36xf32>
    %11 = vector.broadcast %4 : vector<1x36xf32> to vector<16x36xf32>
    %12 = arith.addf %10, %11 : vector<16x36xf32>
    %13 = vector.extract_strided_slice %12 {offsets = [0, 0], sizes = [16, 32], strides = [1, 1]} : vector<16x36xf32> to vector<16x32xf32>
    %14 = vector.extract_strided_slice %12 {offsets = [0, 32], sizes = [16, 4], strides = [1, 1]} : vector<16x36xf32> to vector<16x4xf32>
    %15 = arith.addf %14, %1 : vector<16x4xf32>
    %16 = vector.extract_strided_slice %13 {offsets = [0, 0], sizes = [8, 32], strides = [1, 1]} : vector<16x32xf32> to vector<8x32xf32>
    %17 = vector.extract_strided_slice %15 {offsets = [0, 0], sizes = [8, 4], strides = [1, 1]} : vector<16x4xf32> to vector<8x4xf32>
    %cst_5 = arith.constant dense<0xFF800000> : vector<4xf32>
    %18 = vector.multi_reduction <maximumf>, %17, %cst_5 [0] : vector<8x4xf32> to vector<4xf32>
    %19 = vector.shape_cast %18 : vector<4xf32> to vector<1x4xf32>
    %20 = vector.broadcast %19 : vector<1x4xf32> to vector<8x4xf32>
    %21 = arith.subf %17, %20 : vector<8x4xf32>
    %22 = math.exp %21 : vector<8x4xf32>
    %cst_6 = arith.constant dense<0.000000e+00> : vector<4xf32>
    %23 = vector.multi_reduction <add>, %22, %cst_6 [0] : vector<8x4xf32> to vector<4xf32>
    %24 = vector.shape_cast %23 : vector<4xf32> to vector<1x4xf32>
    %25 = tpu.reciprocal %24 {approx = true} : vector<1x4xf32> -> vector<1x4xf32>
    %26 = vector.broadcast %25 : vector<1x4xf32> to vector<8x4xf32>
    %27 = arith.mulf %22, %26 : vector<8x4xf32>
    %cst_7 = arith.constant dense<0.000000e+00> : vector<8x32xf32>
    %28 = tpu.matmul %27, %9, %cst_7 {dimension_numbers = #tpu.dot_dimension_numbers<[1], [0], [0], [1], [0, 0, 1, 1], [], []>} : vector<8x4xf32>, vector<4x32xf32>, vector<8x32xf32> -> vector<8x32xf32>
    %29 = arith.mulf %28, %16 : vector<8x32xf32>
    %cst_8 = arith.constant dense<0.000000e+00> : vector<32xf32>
    %30 = vector.multi_reduction <add>, %29, %cst_8 [0] : vector<8x32xf32> to vector<32xf32>
    %31 = vector.shape_cast %30 : vector<32xf32> to vector<1x32xf32>
    %32 = vector.broadcast %31 : vector<1x32xf32> to vector<8x32xf32>
    %33 = arith.mulf %16, %32 : vector<8x32xf32>
    %34 = vector.extract_strided_slice %13 {offsets = [8, 0], sizes = [8, 32], strides = [1, 1]} : vector<16x32xf32> to vector<8x32xf32>
    %35 = vector.extract_strided_slice %15 {offsets = [8, 0], sizes = [8, 4], strides = [1, 1]} : vector<16x4xf32> to vector<8x4xf32>
    %cst_9 = arith.constant dense<0xFF800000> : vector<4xf32>
    %36 = vector.multi_reduction <maximumf>, %35, %cst_9 [0] : vector<8x4xf32> to vector<4xf32>
    %37 = vector.shape_cast %36 : vector<4xf32> to vector<1x4xf32>
    %38 = vector.broadcast %37 : vector<1x4xf32> to vector<8x4xf32>
    %39 = arith.subf %35, %38 : vector<8x4xf32>
    %40 = math.exp %39 : vector<8x4xf32>
    %cst_10 = arith.constant dense<0.000000e+00> : vector<4xf32>
    %41 = vector.multi_reduction <add>, %40, %cst_10 [0] : vector<8x4xf32> to vector<4xf32>
    %42 = vector.shape_cast %41 : vector<4xf32> to vector<1x4xf32>
    %43 = tpu.reciprocal %42 {approx = true} : vector<1x4xf32> -> vector<1x4xf32>
    %44 = vector.broadcast %43 : vector<1x4xf32> to vector<8x4xf32>
    %45 = arith.mulf %40, %44 : vector<8x4xf32>
    %cst_11 = arith.constant dense<0.000000e+00> : vector<8x32xf32>
    %46 = tpu.matmul %45, %9, %cst_11 {dimension_numbers = #tpu.dot_dimension_numbers<[1], [0], [0], [1], [0, 0, 1, 1], [], []>} : vector<8x4xf32>, vector<4x32xf32>, vector<8x32xf32> -> vector<8x32xf32>
    %47 = arith.mulf %46, %34 : vector<8x32xf32>
    %cst_12 = arith.constant dense<0.000000e+00> : vector<32xf32>
    %48 = vector.multi_reduction <add>, %47, %cst_12 [0] : vector<8x32xf32> to vector<32xf32>
    %49 = vector.shape_cast %48 : vector<32xf32> to vector<1x32xf32>
    %50 = vector.broadcast %49 : vector<1x32xf32> to vector<8x32xf32>
    %51 = arith.mulf %34, %50 : vector<8x32xf32>
    %52 = tpu.concatenate %33, %51 in 0 : vector<8x32xf32>, vector<8x32xf32> -> vector<16x32xf32>
    %cst_13 = arith.constant dense<0.000000e+00> : vector<16x4xf32>
    %53 = tpu.matmul %52, %5, %cst_13 {dimension_numbers = #tpu.dot_dimension_numbers<[1], [0], [0], [1], [0, 0, 1, 1], [], []>} : vector<16x32xf32>, vector<32x4xf32>, vector<16x4xf32> -> vector<16x4xf32>
    %54 = vector.broadcast %6 : vector<1x4xf32> to vector<16x4xf32>
    %55 = arith.addf %53, %54 : vector<16x4xf32>
    %56 = arith.addf %55, %1 : vector<16x4xf32>
    %57 = vector.extract_strided_slice %56 {offsets = [0, 0], sizes = [8, 4], strides = [1, 1]} : vector<16x4xf32> to vector<8x4xf32>
    %cst_14 = arith.constant dense<0xFF800000> : vector<4xf32>
    %58 = vector.multi_reduction <maximumf>, %57, %cst_14 [0] : vector<8x4xf32> to vector<4xf32>
    %59 = vector.shape_cast %58 : vector<4xf32> to vector<1x4xf32>
    %60 = vector.broadcast %59 : vector<1x4xf32> to vector<8x4xf32>
    %61 = arith.subf %57, %60 : vector<8x4xf32>
    %62 = math.exp %61 : vector<8x4xf32>
    %cst_15 = arith.constant dense<0.000000e+00> : vector<4xf32>
    %63 = vector.multi_reduction <add>, %62, %cst_15 [0] : vector<8x4xf32> to vector<4xf32>
    %64 = vector.shape_cast %63 : vector<4xf32> to vector<1x4xf32>
    %65 = tpu.reciprocal %64 {approx = true} : vector<1x4xf32> -> vector<1x4xf32>
    %66 = vector.broadcast %65 : vector<1x4xf32> to vector<8x4xf32>
    %67 = arith.mulf %62, %66 : vector<8x4xf32>
    %cst_16 = arith.constant dense<0.000000e+00> : vector<8x32xf32>
    %68 = tpu.matmul %67, %9, %cst_16 {dimension_numbers = #tpu.dot_dimension_numbers<[1], [0], [0], [1], [0, 0, 1, 1], [], []>} : vector<8x4xf32>, vector<4x32xf32>, vector<8x32xf32> -> vector<8x32xf32>
    %69 = vector.extract_strided_slice %52 {offsets = [0, 0], sizes = [8, 32], strides = [1, 1]} : vector<16x32xf32> to vector<8x32xf32>
    %70 = arith.mulf %68, %69 : vector<8x32xf32>
    %cst_17 = arith.constant dense<0.000000e+00> : vector<32xf32>
    %71 = vector.multi_reduction <add>, %70, %cst_17 [0] : vector<8x32xf32> to vector<32xf32>
    %72 = vector.shape_cast %71 : vector<32xf32> to vector<1x32xf32>
    %73 = vector.extract_strided_slice %13 {offsets = [0, 0], sizes = [8, 32], strides = [1, 1]} : vector<16x32xf32> to vector<8x32xf32>
    %74 = vector.broadcast %72 : vector<1x32xf32> to vector<8x32xf32>
    %75 = arith.mulf %74, %73 : vector<8x32xf32>
    %76 = vector.extract_strided_slice %56 {offsets = [8, 0], sizes = [8, 4], strides = [1, 1]} : vector<16x4xf32> to vector<8x4xf32>
    %cst_18 = arith.constant dense<0xFF800000> : vector<4xf32>
    %77 = vector.multi_reduction <maximumf>, %76, %cst_18 [0] : vector<8x4xf32> to vector<4xf32>
    %78 = vector.shape_cast %77 : vector<4xf32> to vector<1x4xf32>
    %79 = vector.broadcast %78 : vector<1x4xf32> to vector<8x4xf32>
    %80 = arith.subf %76, %79 : vector<8x4xf32>
    %81 = math.exp %80 : vector<8x4xf32>
    %cst_19 = arith.constant dense<0.000000e+00> : vector<4xf32>
    %82 = vector.multi_reduction <add>, %81, %cst_19 [0] : vector<8x4xf32> to vector<4xf32>
    %83 = vector.shape_cast %82 : vector<4xf32> to vector<1x4xf32>
    %84 = tpu.reciprocal %83 {approx = true} : vector<1x4xf32> -> vector<1x4xf32>
    %85 = vector.broadcast %84 : vector<1x4xf32> to vector<8x4xf32>
    %86 = arith.mulf %81, %85 : vector<8x4xf32>
    %cst_20 = arith.constant dense<0.000000e+00> : vector<8x32xf32>
    %87 = tpu.matmul %86, %9, %cst_20 {dimension_numbers = #tpu.dot_dimension_numbers<[1], [0], [0], [1], [0, 0, 1, 1], [], []>} : vector<8x4xf32>, vector<4x32xf32>, vector<8x32xf32> -> vector<8x32xf32>
    %88 = vector.extract_strided_slice %52 {offsets = [8, 0], sizes = [8, 32], strides = [1, 1]} : vector<16x32xf32> to vector<8x32xf32>
    %89 = arith.mulf %87, %88 : vector<8x32xf32>
    %cst_21 = arith.constant dense<0.000000e+00> : vector<32xf32>
    %90 = vector.multi_reduction <add>, %89, %cst_21 [0] : vector<8x32xf32> to vector<32xf32>
    %91 = vector.shape_cast %90 : vector<32xf32> to vector<1x32xf32>
    %92 = vector.extract_strided_slice %13 {offsets = [8, 0], sizes = [8, 32], strides = [1, 1]} : vector<16x32xf32> to vector<8x32xf32>
    %93 = vector.broadcast %91 : vector<1x32xf32> to vector<8x32xf32>
    %94 = arith.mulf %93, %92 : vector<8x32xf32>
    %95 = tpu.concatenate %75, %94 in 0 : vector<8x32xf32>, vector<8x32xf32> -> vector<16x32xf32>
    %cst_22 = arith.constant dense<0.000000e+00> : vector<16x32xf32>
    %96 = tpu.matmul %95, %7, %cst_22 {dimension_numbers = #tpu.dot_dimension_numbers<[1], [0], [0], [1], [0, 0, 1, 1], [], []>} : vector<16x32xf32>, vector<32x32xf32>, vector<16x32xf32> -> vector<16x32xf32>
    %97 = vector.broadcast %8 : vector<1x32xf32> to vector<16x32xf32>
    %98 = arith.addf %96, %97 : vector<16x32xf32>
    %99 = arith.addf %98, %13 : vector<16x32xf32>
    %c0_23 = arith.constant 0 : index
    %c0_24 = arith.constant 0 : index
    %100 = vector.load %arg3[%c0_23, %c0_24] : memref<16x32xf32, #tpu.memory_space<vmem>>, vector<16x32xf32>
    tpu.vector_store %arg3[%c0_23, %c0_24], %99 {strides = array<i32>} : memref<16x32xf32, #tpu.memory_space<vmem>>, vector<16x32xf32>,
    return
  }
}

</mosaic_0001>

<bundles_post_ra>
// kernel: fast_self_attention_forward.1
= control target key start
LH: loop header
LB: loop body
LE: loop exit
PB: predicated region body
PF: predicated region fallthrough
CT: control target
= control target key end

     0   :  { %8 = vsyncpa [#allocation3], 0  ;;  %s1150_s0 = inlined_call_operand.vmem [shape: f32[16,32], index: 0, kind: input, shape index: {}]   ;;  %s1151_s1 = inlined_call_operand.vmem [shape: f32[16,4], index: 1, kind: input, shape index: {}]   ;;  %s1152_s2 = inlined_call_operand.hbm [shape: f32[37,72], index: 2, kind: input, shape index: {}]   ;;  %s1153_s3 = inlined_call_operand.hbm [shape: f32[16,32], index: 3, kind: output, shape index: {}]  }
   0x1   :  { %9 = vsyncpa [#allocation4], 0  ;;  %s980_s12 = smov [#allocation2]   ;;  %s932_s16 = scalar_lea.hbm %s1152_s2, 640 }
   0x2   :  { %s19_s13 = sshll.u32 %s980_s12, 4  ;;  %p933_p0 = scmp.ne.s32.totalorder %s1152_s2, %s932_s16  ;;  %s20_s13 = int_to_ptr.vmem [resolvable:$true] %s19_s13 }
   0x3   :  { %p936_p1 = scmp.lt.u32.totalorder %s932_s16, %s1152_s2 }
   0x5   :  { %p938_p2 = pnand %p936_p1, %p933_p0 }
   0x7   :  { %941 = shalt.err (!%p938_p2)
}
   0x8   :  { %s942_s21 = scalar_lea.vmem %s20_s13, 640  ;;  %p947_p4 = scmp.lt.s32.totalorder %s20_s13, %s20_s13 }
   0x9   :  { %p943_p3 = scmp.ne.s32.totalorder %s20_s13, %s942_s21  ;;  %p948_p5 = scmp.lt.s32.totalorder %s942_s21, %s942_s21 }
   0xb   :  { %p949_p6 = por %p948_p5, %p947_p4 }
   0xd   :  { %p950_p7 = pnand %p949_p6, %p943_p3 }
   0xf   :  { %953 = shalt.err (!%p950_p7)
}
  0x10   :  { %s981_s22 = smov 128   ;;  %s982_s23 = smov 8  }
  0x11   :  { %25 = dma.hbm_to_vmem [thread:$0]  %s1152_s2, 640, %s20_s13, [#allocation3], %s981_s22, %s981_s22, %s982_s23  }
  0x12   :  { %976 = dma.done.wait [#allocation3], 640  }
  0x13   :  { %977 = vsyncadd [#allocation3], 4294966656  ;;  %vm42_vm0 = vcmask 261120   ;;  %v1025_v0 = vld [vmem:[#allocation2] sm:$0xff]  ;;  %v1027_v1 = vld [vmem:[#allocation2 + $0x8] sm:$0xff]  ;;  %s983_s29 = smov 32   ;;  %v38_v13 = vlaneseq }
  0x14   :  { %v1029_v2 = vld [vmem:[#allocation2 + $0x10] sm:$0xff]  ;;  %v862_v3 = vpack.c.bf16 %v1027_v1, %v1025_v0  ;;  %v1033_v4 = vld [vmem:[#allocation2 + $0x18] sm:$0xff]  ;;  %v29_v5 = vld [vmem:[%s1150_s0] sm:$0xff]  ;;  %vm162_vm1 = vcmask 1043456   ;;  %v984_v12 = vmov 0.0   ;;  %vm985_vm2 = vmmov 0  }
  0x15   :  { %v866_v6 = vpack.c.bf16 %v1033_v4, %v1029_v2  ;;  %817 = vmatprep.mubr.msk.f32.mxu0 %vm42_vm0, %v29_v5  ;;  %v1044_v7 = vld [vmem:[%s1151_s1] sm:$0xff]  ;;  %v1050_v8 = vld [vmem:[%s1151_s1 + $0x8] sm:$0xff]  ;;  %825 = vmatprep.subr.mxu1 %v984_v12  ;;  %v39_v14 = vshrl.u32 %v38_v13, 7  ;;  %vm134_vm3 = vcmask 294144   ;;  %v896_v59 = vpack.i.bf16 %v1027_v1, %v1025_v0  ;;  %s987_s1 = smov 96   ;;  %s988_s7 = smov 88  }
  0x16   :  { %863 = vmatprep.subr.bf16.mxu0 %v862_v3  ;;  %126 = vrot.lane.b32.xlu0 %v1044_v7, %s983_s29  ;;  %v30_v9 = vld [vmem:[%s1150_s0 + $0x8] sm:$0xff]  ;;  %v37_v10 = vld [vmem:[#allocation2 + $0x20] sm:$0x1f]  ;;  %s986_s0 = smov 92   ;;  %vm159_vm4 = vcmask 31744   ;;  %s989_s8 = smov [#allocation5]  }
  0x17   :  { %865 = vmatpush3.bf16.msra.mxu0 %v862_v3  ;;  %v1057_v11 = vrot.slane %v37_v10, 1  ;;  %827 = vmatprep.mubr.msk.f32.mxu1 %vm985_vm2, %v984_v12  ;;  %v40_v15 = vsub.s32 0, %v39_v14  ;;  %v901_v3 = vpack.i.bf16 %v1033_v4, %v1029_v2  ;;  %s757_s9 = sshll.u32 %s989_s8, 4  ;;  %s758_s9 = int_to_ptr.vmem [resolvable:$true] %s757_s9 }
  0x18   :  { %867 = vmatprep.subr.bf16.mxu0 %v866_v6  ;;  %s954_s10 = scalar_lea.vmem %s758_s9, 256  ;;  %p959_p9 = scmp.lt.s32.totalorder %s758_s9, %s758_s9 }
  0x19   :  { %826 = vmatpush3.msk.msra.mxu1 %vm162_vm1, %v1057_v11  ;;  %v1070_v17 = vrot.slane %v37_v10, %v40_v15  ;;  %p955_p8 = scmp.ne.s32.totalorder %s758_s9, %s954_s10  ;;  %p960_p10 = scmp.lt.s32.totalorder %s954_s10, %s954_s10 }
  0x1a   :  { %128 = vrot.lane.b32.xlu0 %v1050_v8, %s983_s29 }
  0x1b   :  { %869 = vmatpush3.bf16.msra.mxu0 %v866_v6  ;;  %p961_p11 = por %p960_p10, %p959_p9 }
  0x1c   :  { %820 = vmatprep.subr.mxu0 %v984_v12 }
  0x1d   :  { %p962_p12 = pnand %p961_p11, %p955_p8 }
  0x1e   :  { %818 = vmatmul.mubr.msk.f32.vlgmr.msra.gmra.mrb[0].mxu0 %vm42_vm0, %v30_v9  ;;  %897 = vrot.lane.b32.xlu0 %v896_v59, %s986_s0 }
  0x1f   :  { %822 = vmatprep.mubr.msk.f32.mxu0 %vm985_vm2, %v984_v12  ;;  %821 = vmatpush3.msk.msra.mxu0 %vm162_vm1, %v1057_v11 }
  0x20   :  { %841 = vmatprep.subr.mxu0 %v984_v12 }
  0x22   :  { %364 = vrot.lane.b32.xlu0 %v1070_v17, %s986_s0 }
  0x26   :  { %912 = vrot.lane.b32.xlu0 %v901_v3, %s988_s7 }
  0x88   :  { %v127_v16 = vpop.permute.xlu0 %126 }
  0x8c   :  { %v129_v19 = vpop.permute.xlu0 %128 }
  0x90   :  { %v898_v1 = vpop.permute.xlu0 %897 }
  0x91   :  { %v900_v6 = vunpack.i.h.bf16 %v898_v1  ;;  %v899_v9 = vunpack.i.l.bf16 %v898_v1 }
  0x93   :  { %v870_v2 = vpack.c.bf16 %v900_v6, %v899_v9 }
  0x95   :  { %871 = vmatprep.subr.bf16.mxu1 %v870_v2 }
  0xf1   :  { %v819_v18 = vpop.f32.mrb[0].mxu0 }
  0xf2   :  { %v1073_v20 = vadd.f32 %v819_v18, %v1070_v17  ;;  %v115_v21 = vpop.f32.mrb[1].mxu0 }
  0xf3   :  { %v1076_v22 = vadd.f32 %v115_v21, %v1070_v17 }
  0xf4   :  { %v133_v23 = vadd.f32 %v129_v19, %v1073_v20 }
  0xf5   :  { %v132_v24 = vadd.f32 %v127_v16, %v1076_v22 }
  0xf6   :  { %v244_v25 = vsel %vm134_vm3, %v133_v23, -inf }
  0xf7   :  { %v135_v26 = vsel %vm134_vm3, %v132_v24, -inf  ;;  %v245_v27 = vrot.slane %v244_v25, 4 }
  0xf8   :  { %v136_v28 = vrot.slane %v135_v26, 4 }
  0xf9   :  { %v246_v29 = vmax.f32 %v244_v25, %v245_v27 }
  0xfa   :  { %v137_v30 = vmax.f32 %v135_v26, %v136_v28 }
  0xfb   :  { %v247_v31 = vrot.slane %v246_v29, 2 }
  0xfc   :  { %v138_v32 = vrot.slane %v137_v30, 2 }
  0xfd   :  { %v248_v33 = vmax.f32 %v246_v29, %v247_v31 }
  0xfe   :  { %v139_v34 = vmax.f32 %v137_v30, %v138_v32 }
  0xff   :  { %v249_v35 = vrot.slane %v248_v33, 1 }
 0x100   :  { %v140_v36 = vrot.slane %v139_v34, 1 }
 0x101   :  { %v250_v37 = vmax.f32 %v248_v33, %v249_v35 }
 0x102   :  { %v141_v38 = vmax.f32 %v139_v34, %v140_v36 }
 0x103   :  { %v251_v39 = vsub.f32 %v133_v23, %v250_v37 }
 0x104   :  { %v142_v40 = vsub.f32 %v132_v24, %v141_v38 }
 0x105   :  { %v252_v41 = vmul.f32 1.442695, %v251_v39 }
 0x106   :  { %v143_v42 = vmul.f32 1.442695, %v142_v40  ;;  %v365_v40 = vpop.permute.xlu0 %364 }
 0x107   :  { %916 = vpow2.f32 %v252_v41 }
 0x108   :  { %918 = vpow2.f32 %v143_v42 }
 0x111   :  { %v917_v43 = vpop.eup %916 }
 0x112   :  { %v919_v44 = vpop.eup %918  ;;  %v254_v45 = vsel %vm134_vm3, %v917_v43, 0.0 }
 0x113   :  { %v145_v46 = vsel %vm134_vm3, %v919_v44, 0.0  ;;  %v255_v47 = vrot.slane %v254_v45, 4 }
 0x114   :  { %v146_v48 = vrot.slane %v145_v46, 4 }
 0x115   :  { %v256_v49 = vadd.f32 %v255_v47, %v254_v45 }
 0x116   :  { %v147_v50 = vadd.f32 %v146_v48, %v145_v46 }
 0x117   :  { %v257_v51 = vrot.slane %v256_v49, 2 }
 0x118   :  { %v148_v52 = vrot.slane %v147_v50, 2 }
 0x119   :  { %v258_v53 = vadd.f32 %v257_v51, %v256_v49 }
 0x11a   :  { %v149_v54 = vadd.f32 %v148_v52, %v147_v50 }
 0x11b   :  { %v259_v55 = vrot.slane %v258_v53, 1 }
 0x11c   :  { %v150_v56 = vrot.slane %v149_v54, 1 }
 0x11d   :  { %v260_v58 = vadd.f32 %v259_v55, %v258_v53 }
 0x11e   :  { %v151_v57 = vadd.f32 %v150_v56, %v149_v54 }
 0x120   :  { %920 = vrcp.f32 %v151_v57 }
 0x121   :  { %922 = vrcp.f32 %v260_v58 }
 0x12a   :  { %v921_v60 = vpop.eup %920 }
 0x12b   :  { %v153_v61 = vmul.f32 %v921_v60, %v919_v44  ;;  %v923_v62 = vpop.eup %922 }
 0x12c   :  { %v262_v63 = vmul.f32 %v923_v62, %v917_v43 }
 0x12d   :  { %155 = vrot.lane.b32.xlu1 %v153_v61, %s987_s1 }
 0x131   :  { %264 = vrot.lane.b32.xlu1 %v262_v63, %s987_s1 }
 0x135   :  { %902 = vrot.lane.b32.xlu1 %v901_v3, %s986_s0 }
 0x139   :  { %907 = vrot.lane.b32.xlu1 %v896_v59, %s988_s7 }
 0x13d   :  { %664 = vrot.lane.b32.xlu1 %v1070_v17, %s988_s7 }
 0x19f   :  { %v156_v5 = vpop.permute.xlu1 %155 }
 0x1a0   :  { %823 = vmatmul.mubr.msk.f32.vlgmr.msra.gmra.mrb[2].mxu0 %vm159_vm4, %v156_v5 }
 0x1a1   :  { %842 = vmatpush3.msk.msra.mxu0 %vm162_vm1, %v1057_v11  ;;  %843 = vmatprep.mubr.msk.f32.mxu0 %vm985_vm2, %v984_v12 }
 0x1a2   :  { %846 = vmatprep.subr.mxu0 %v984_v12 }
 0x1a3   :  { %v265_v0 = vpop.permute.xlu1 %264 }
 0x1a4   :  { %828 = vmatmul.mubr.msk.f32.vlgmr.msra.gmra.mrb[0].mxu1 %vm159_vm4, %v265_v0 }
 0x1a5   :  { %873 = vmatpush3.bf16.msra.mxu1 %v870_v2 }
 0x1a7   :  { %v903_v4 = vpop.permute.xlu1 %902 }
 0x1a8   :  { %v905_v10 = vunpack.i.h.bf16 %v903_v4  ;;  %v904_v13 = vunpack.i.l.bf16 %v903_v4 }
 0x1aa   :  { %v874_v14 = vpack.c.bf16 %v905_v10, %v904_v13 }
 0x1ac   :  { %875 = vmatprep.subr.bf16.mxu1 %v874_v14 }
 0x1ad   :  { %877 = vmatpush3.bf16.msra.mxu1 %v874_v14 }
 0x273   :  { %v231_v15 = vpop.f32.mrb[2].mxu0 }
 0x274   :  { %v235_v16 = vmul.f32 %v231_v15, %v1076_v22  ;;  %v824_v18 = vpop.f32.mrb[3].mxu0 }
 0x276   :  { %v236_v19 = vsel %vm42_vm0, %v235_v16, 0.0 }
 0x277   :  { %v237_v21 = vrot.slane %v236_v19, 4  ;;  %v334_v23 = vpop.f32.mrb[0].mxu1 }
 0x278   :  { %v338_v24 = vmul.f32 %v334_v23, %v1073_v20  ;;  %v829_v25 = vpop.f32.mrb[1].mxu1 }
 0x279   :  { %v238_v26 = vadd.f32 %v237_v21, %v236_v19  ;;  %v908_v25 = vpop.permute.xlu1 %907 }
 0x27a   :  { %v339_v27 = vsel %vm42_vm0, %v338_v24, 0.0 }
 0x27b   :  { %v239_v28 = vrot.slane %v238_v26, 2  ;;  %v340_v29 = vrot.slane %v339_v27, 4 }
 0x27d   :  { %v240_v30 = vadd.f32 %v239_v28, %v238_v26  ;;  %v341_v31 = vadd.f32 %v340_v29, %v339_v27  ;;  %v910_v26 = vunpack.i.h.bf16 %v908_v25  ;;  %v909_v27 = vunpack.i.l.bf16 %v908_v25  ;;  %v913_v29 = vpop.permute.xlu0 %912 }
 0x27f   :  { %v241_v32 = vrot.slane %v240_v30, 1  ;;  %v342_v33 = vrot.slane %v341_v31, 2  ;;  %v878_v28 = vpack.c.bf16 %v910_v26, %v909_v27 }
 0x281   :  { %v242_v34 = vadd.f32 %v241_v32, %v240_v30  ;;  %v343_v35 = vadd.f32 %v342_v33, %v341_v31  ;;  %v915_v30 = vunpack.i.h.bf16 %v913_v29  ;;  %v914_v31 = vunpack.i.l.bf16 %v913_v29  ;;  %879 = vmatprep.subr.bf16.mxu1 %v878_v28 }
 0x283   :  { %v344_v36 = vrot.slane %v343_v35, 1  ;;  %v1101_v37 = vmul.f32 %v242_v34, %v1076_v22  ;;  %v882_v32 = vpack.c.bf16 %v915_v30, %v914_v31 }
 0x285   :  { %v345_v38 = vadd.f32 %v344_v36, %v343_v35  ;;  %838 = vmatprep.mubr.msk.f32.mxu1 %vm42_vm0, %v1101_v37 }
 0x287   :  { %v1106_v39 = vmul.f32 %v345_v38, %v1073_v20 }
 0x289   :  { %839 = vmatmul.mubr.msk.f32.vlgmr.msra.gmra.mrb[2].mxu1 %vm42_vm0, %v1106_v39 }
 0x28a   :  { %881 = vmatpush3.bf16.msra.mxu1 %v878_v28 }
 0x28b   :  { %883 = vmatprep.subr.bf16.mxu1 %v882_v32 }
 0x28e   :  { %885 = vmatpush3.bf16.msra.mxu1 %v882_v32 }
 0x35c   :  { %v840_v41 = vpop.f32.mrb[2].mxu1 }
 0x35d   :  { %v445_v42 = vadd.f32 %v840_v41, %v365_v40  ;;  %v439_v43 = vpop.f32.mrb[3].mxu1 }
 0x35e   :  { %v440_v44 = vadd.f32 %v439_v43, %v365_v40 }
 0x35f   :  { %v449_v45 = vadd.f32 %v445_v42, %v1050_v8 }
 0x360   :  { %v448_v46 = vadd.f32 %v440_v44, %v1044_v7 }
 0x361   :  { %v551_v47 = vsel %vm159_vm4, %v449_v45, -inf }
 0x362   :  { %v552_v48 = vrot.slane %v551_v47, 4  ;;  %v450_v49 = vsel %vm159_vm4, %v448_v46, -inf }
 0x363   :  { %v451_v50 = vrot.slane %v450_v49, 4 }
 0x364   :  { %v553_v51 = vmax.f32 %v551_v47, %v552_v48 }
 0x365   :  { %v452_v52 = vmax.f32 %v450_v49, %v451_v50 }
 0x366   :  { %v554_v53 = vrot.slane %v553_v51, 2 }
 0x367   :  { %v453_v54 = vrot.slane %v452_v52, 2 }
 0x368   :  { %v555_v17 = vmax.f32 %v553_v51, %v554_v53  ;;  %v665_v53 = vpop.permute.xlu1 %664 }
 0x369   :  { %v454_v55 = vmax.f32 %v452_v52, %v453_v54 }
 0x36a   :  { %v556_v56 = vrot.slane %v555_v17, 1 }
 0x36b   :  { %v455_v57 = vrot.slane %v454_v55, 1 }
 0x36c   :  { %v557_v58 = vmax.f32 %v555_v17, %v556_v56 }
 0x36d   :  { %v456_v59 = vmax.f32 %v454_v55, %v455_v57 }
 0x36e   :  { %v558_v60 = vsub.f32 %v449_v45, %v557_v58 }
 0x36f   :  { %v457_v8 = vsub.f32 %v448_v46, %v456_v59 }
 0x370   :  { %v559_v61 = vmul.f32 1.442695, %v558_v60 }
 0x371   :  { %v458_v7 = vmul.f32 1.442695, %v457_v8 }
 0x372   :  { %924 = vpow2.f32 %v559_v61 }
 0x373   :  { %926 = vpow2.f32 %v458_v7 }
 0x37c   :  { %v925_v62 = vpop.eup %924 }
 0x37d   :  { %v927_v63 = vpop.eup %926  ;;  %v561_v3 = vsel %vm159_vm4, %v925_v62, 0.0 }
 0x37e   :  { %v562_v5 = vrot.slane %v561_v3, 4  ;;  %v460_v0 = vsel %vm159_vm4, %v927_v63, 0.0 }
 0x37f   :  { %v461_v1 = vrot.slane %v460_v0, 4 }
 0x380   :  { %v563_v6 = vadd.f32 %v562_v5, %v561_v3 }
 0x381   :  { %v462_v9 = vadd.f32 %v461_v1, %v460_v0 }
 0x382   :  { %v564_v2 = vrot.slane %v563_v6, 2 }
 0x383   :  { %v463_v4 = vrot.slane %v462_v9, 2 }
 0x384   :  { %v565_v10 = vadd.f32 %v564_v2, %v563_v6 }
 0x385   :  { %v464_v13 = vadd.f32 %v463_v4, %v462_v9 }
 0x386   :  { %v566_v14 = vrot.slane %v565_v10, 1 }
 0x387   :  { %v465_v15 = vrot.slane %v464_v13, 1 }
 0x388   :  { %v567_v16 = vadd.f32 %v566_v14, %v565_v10 }
 0x389   :  { %v466_v18 = vadd.f32 %v465_v15, %v464_v13 }
 0x38b   :  { %928 = vrcp.f32 %v466_v18 }
 0x38c   :  { %930 = vrcp.f32 %v567_v16 }
 0x395   :  { %v929_v19 = vpop.eup %928 }
 0x396   :  { %v468_v21 = vmul.f32 %v929_v19, %v927_v63  ;;  %v931_v23 = vpop.eup %930 }
 0x397   :  { %v569_v24 = vmul.f32 %v931_v23, %v925_v62 }
 0x398   :  { %844 = vmatmul.mubr.msk.f32.vlgmr.msra.gmra.mrb[4].mxu0 %vm159_vm4, %v468_v21 }
 0x399   :  { %847 = vmatpush3.msk.msra.mxu0 %vm162_vm1, %v1057_v11  ;;  %848 = vmatprep.mubr.msk.f32.mxu0 %vm985_vm2, %v984_v12 }
 0x39c   :  { %849 = vmatmul.mubr.msk.f32.vlgmr.msra.gmra.mrb[6].mxu0 %vm159_vm4, %v569_v24 }
 0x46b   :  { %v538_v33 = vpop.f32.mrb[4].mxu0 }
 0x46c   :  { %v542_v11 = vmul.f32 %v538_v33, %v1101_v37  ;;  %v845_v34 = vpop.f32.mrb[5].mxu0 }
 0x46e   :  { %v543_v12 = vsel %vm42_vm0, %v542_v11, 0.0 }
 0x46f   :  { %v544_v35 = vrot.slane %v543_v12, 4  ;;  %v639_v36 = vpop.f32.mrb[6].mxu0 }
 0x470   :  { %v643_v38 = vmul.f32 %v639_v36, %v1106_v39  ;;  %v850_v40 = vpop.f32.mrb[7].mxu0 }
 0x471   :  { %v545_v41 = vadd.f32 %v544_v35, %v543_v12 }
 0x472   :  { %v644_v42 = vsel %vm42_vm0, %v643_v38, 0.0 }
 0x473   :  { %v546_v43 = vrot.slane %v545_v41, 2  ;;  %v645_v44 = vrot.slane %v644_v42, 4 }
 0x475   :  { %v547_v45 = vadd.f32 %v546_v43, %v545_v41  ;;  %v646_v46 = vadd.f32 %v645_v44, %v644_v42 }
 0x477   :  { %v548_v47 = vrot.slane %v547_v45, 1  ;;  %v647_v48 = vrot.slane %v646_v46, 2 }
 0x479   :  { %v549_v49 = vadd.f32 %v548_v47, %v547_v45  ;;  %v648_v50 = vadd.f32 %v647_v48, %v646_v46 }
 0x47b   :  { %v649_v37 = vrot.slane %v648_v50, 1  ;;  %v550_v51 = vmul.f32 %v549_v49, %v1076_v22 }
 0x47d   :  { %v650_v52 = vadd.f32 %v649_v37, %v648_v50  ;;  %859 = vmatprep.mubr.msk.f32.mxu1 %vm42_vm0, %v550_v51 }
 0x47f   :  { %v651_v39 = vmul.f32 %v650_v52, %v1073_v20 }
 0x481   :  { %860 = vmatmul.mubr.msk.f32.vlgmr.msra.gmra.mrb[4].mxu1 %vm42_vm0, %v651_v39 }
 0x554   :  { %v861_v54 = vpop.f32.mrb[4].mxu1 }
 0x555   :  { %v745_v17 = vadd.f32 %v861_v54, %v665_v53  ;;  %v739_v55 = vpop.f32.mrb[5].mxu1 }
 0x556   :  { %v740_v56 = vadd.f32 %v739_v55, %v665_v53 }
 0x557   :  { %v749_v57 = vadd.f32 %v745_v17, %v1073_v20 }
 0x558   :  { %v748_v58 = vadd.f32 %v740_v56, %v1076_v22 }
 0x559   :  { %751 = vst.msk [vmem:[#allocation5 + $0x8] sm:$0xff] %vm42_vm0, %v749_v57 }
 0x55a   :  { %750 = vst.msk [vmem:[#allocation5] sm:$0xff] %vm42_vm0, %v748_v58 }
 0x55b   :  { %965 = shalt.err (!%p962_p12)
}
 0x55c   :  { %s966_s13 = scalar_lea.hbm %s1153_s3, 256 }
 0x55d   :  { %p967_p13 = scmp.ne.s32.totalorder %s1153_s3, %s966_s13  ;;  %p970_p0 = scmp.lt.u32.totalorder %s966_s13, %s1153_s3 }
 0x55f   :  { %p972_p1 = pnand %p970_p0, %p967_p13 }
 0x561   :  { %975 = shalt.err (!%p972_p1)
}
 0x562   :  { %763 = dma.vmem_to_hbm [thread:$0]  %s758_s9, 256, %s1153_s3, [#allocation4], %s981_s22, %s981_s22, %s982_s23  }
 0x563   :  { %978 = dma.done.wait [#allocation4], 256  }
 0x564   :  { %979 = vsyncadd [#allocation4], 4294967040 }
 0x565   :  { %767 = vsyncpa [#allocation3], 1 }
 0x566   :  { %768 = vsyncpa [#allocation4], 1 }

</bundles_post_ra>
